<compile_context>
chip_gen: v6e
topology: v6e:2x2x1
jax: 0.10.0
libtpu: 0.0.40
codegen_flags: <defaults>
</compile_context>

<pallas_src>
import functools

import jax
import jax.numpy as jnp
from jax.experimental import pallas as pl
from jax.experimental.pallas import tpu as pltpu


def _round_up(n, m):
    return ((n + m - 1) // m) * m


def _mlp_logsoftmax_kernel(x_ref, w1_ref, b1_ref, w2_ref, b2_ref, o_ref, *,
                           nonlinearity, matmul_dtype):
    md = matmul_dtype

    x = x_ref[...]
    if x.dtype != md:
        x = x.astype(md)
    w1 = w1_ref[...]
    if w1.dtype != md:
        w1 = w1.astype(md)

    # hidden pre-activation: MXU matmul with f32 accumulation, bias add on VPU.
    h = jnp.dot(x, w1, preferred_element_type=jnp.float32) + b1_ref[...]

    if nonlinearity == "tanh":
        if md == jnp.dtype(jnp.bfloat16):
            # bf16 EUP path (v6e/v7x); also feeds the second matmul directly.
            h = jnp.tanh(h.astype(md))
        else:
            h = jnp.tanh(h)
    elif nonlinearity == "relu":
        h = jnp.maximum(h, 0.0)
    # "none" -> identity

    if h.dtype != md:
        h = h.astype(md)
    w2 = w2_ref[...]
    if w2.dtype != md:
        w2 = w2.astype(md)

    # logits = hidden @ W2 + b2.  The lane-padding mask is baked into b2:
    # padded columns of W2 are zero and the matching b2 entries are -1e30, so
    # padded logits are exactly -1e30 and vanish under the log-softmax.
    logits = jnp.dot(h, w2, preferred_element_type=jnp.float32) + b2_ref[...]

    # numerically stable log-softmax over the last dim (always f32)
    m = jnp.max(logits, axis=-1, keepdims=True)
    z = logits - m
    lse = jnp.log(jnp.sum(jnp.exp(z), axis=-1, keepdims=True))
    o_ref[...] = (z - lse).astype(o_ref.dtype)


def _physical_vmem_bytes():
    try:
        return int(pltpu.get_tpu_info().vmem_capacity_bytes)
    except Exception:
        return 64 << 20  # conservative (v7x-sized) fallback


def mlp_logsoftmax(x, w1, b1, w2, b2, *, nonlinearity="tanh",
                   block_batch=2048, matmul_dtype=jnp.float32,
                   out_dtype=jnp.float32, min_grid_steps=2):
    """x: (B, I); w1: (I, H); b1: (1, H); w2: (H, O); b2: (1, O) -> (B, O)."""
    assert nonlinearity in ("tanh", "relu", "none")
    B, I = x.shape
    H = w1.shape[1]
    O = w2.shape[1]
    md = jnp.dtype(matmul_dtype)
    od = jnp.dtype(out_dtype)

    # Lane-dense padding of the feature dims (multiples of 128 lanes).
    H_pad = _round_up(H, 128)
    O_pad = _round_up(O, 128)

    # Padding-aware, core-count-friendly batch tiling:
    #   - tile-fit the batch so padding waste is < 8 rows per tile,
    #   - keep at least `min_grid_steps` grid steps (when B allows) so the
    #     "parallel" batch axis can shard across both v7x TensorCores.
    n_tiles = max(pl.cdiv(B, block_batch), min(min_grid_steps, pl.cdiv(B, 8)))
    TB = _round_up(pl.cdiv(B, n_tiles), 8)
    n_tiles = pl.cdiv(B, TB)
    B_pad = n_tiles * TB

    # Zero-padding is exact: padded K/N entries contribute 0 to the matmuls;
    # padded logit lanes carry b2 = -1e30 (masked "for free"); padded batch
    # rows and padded output lanes are sliced off below.
    xp = jnp.pad(x, ((0, B_pad - B), (0, 0))).astype(md)
    w1p = jnp.pad(w1, ((0, 0), (0, H_pad - H))).astype(md)
    b1p = jnp.pad(b1, ((0, 0), (0, H_pad - H)))                      # f32
    w2p = jnp.pad(w2, ((0, H_pad - H), (0, O_pad - O))).astype(md)
    b2p = jnp.pad(b2, ((0, 0), (0, O_pad - O)),
                  constant_values=jnp.float32(-1e30))                # f32 + mask

    grid = (n_tiles,)

    kernel = functools.partial(
        _mlp_logsoftmax_kernel,
        nonlinearity=nonlinearity,
        matmul_dtype=md,
    )

    # VMEM budget (bytes):
    #   resident weights (double-buffered by default) + biases
    #   + double-buffered x/out tiles
    #   + simultaneously-live f32 intermediates (h, logits, exp(z)).
    wb = md.itemsize
    weights_bytes = 2 * wb * (I * H_pad + H_pad * O_pad)
    bias_bytes = 2 * 4 * (H_pad + O_pad)
    io_bytes = 2 * TB * (wb * I + od.itemsize * O_pad)
    inter_bytes = 4 * TB * (H_pad + 2 * O_pad)
    vmem_bytes = weights_bytes + bias_bytes + io_bytes + inter_bytes
    vmem_limit = int(min(max(2 * vmem_bytes, 16 << 20),
                         (_physical_vmem_bytes() * 3) // 4))

    trans = B_pad * O_pad + B_pad                      # exp + log
    if nonlinearity == "tanh":
        trans += B_pad * H_pad
    cost = pl.CostEstimate(
        flops=2 * B_pad * (I * H_pad + H_pad * O_pad),
        transcendentals=trans,
        bytes_accessed=(wb * (B_pad * I + I * H_pad + H_pad * O_pad)
                        + 4 * (H_pad + O_pad)
                        + od.itemsize * B_pad * O_pad),
    )

    out_padded = pl.pallas_call(
        kernel,
        out_shape=jax.ShapeDtypeStruct((B_pad, O_pad), od),
        grid=grid,
        in_specs=[
            pl.BlockSpec((TB, I), lambda i: (i, 0)),      # x streamed per tile
            pl.BlockSpec((I, H_pad), lambda i: (0, 0)),   # weights VMEM-resident
            pl.BlockSpec((1, H_pad), lambda i: (0, 0)),
            pl.BlockSpec((H_pad, O_pad), lambda i: (0, 0)),
            pl.BlockSpec((1, O_pad), lambda i: (0, 0)),
        ],
        out_specs=pl.BlockSpec((TB, O_pad), lambda i: (i, 0)),
        compiler_params=pltpu.CompilerParams(
            dimension_semantics=("parallel",),
            vmem_limit_bytes=vmem_limit,
        ),
        cost_estimate=cost,
    )(xp, w1p, b1p, w2p, b2p)

    return out_padded[:B, :O]


def init_params(key, input_size, hidden_size, output_size):
    """Deterministic init mimicking nn.Linear (uniform +/- 1/sqrt(fan_in))."""
    k1, k2, k3, k4 = jax.random.split(key, 4)
    bound1 = 1.0 / jnp.sqrt(input_size)
    bound2 = 1.0 / jnp.sqrt(hidden_size)
    # Stored pre-transposed: (in_features, out_features)
    w1 = jax.random.uniform(k1, (input_size, hidden_size), jnp.float32,
                            -bound1, bound1)
    b1 = jax.random.uniform(k2, (1, hidden_size), jnp.float32, -bound1, bound1)
    w2 = jax.random.uniform(k3, (hidden_size, output_size), jnp.float32,
                            -bound2, bound2)
    b2 = jax.random.uniform(k4, (1, output_size), jnp.float32, -bound2, bound2)
    return w1, b1, w2, b2


if __name__ == "__main__":
    key = jax.random.PRNGKey(0)
    kx, kp = jax.random.split(key)

    batch, input_size, hidden_size, output_size = 256, 32, 64, 16
    nonlinearity = "tanh"

    x = jax.random.normal(kx, (batch, input_size), jnp.float32)
    w1, b1, w2, b2 = init_params(kp, input_size, hidden_size, output_size)

    # pure-JAX reference
    h_ref = jnp.tanh(x @ w1 + b1)
    ref = jax.nn.log_softmax(h_ref @ w2 + b2, axis=1)

    # f32 path; block_batch=128 -> grid=(2,), exercising the pipelined /
    # parallel batch axis even at this small demo size.
    out = mlp_logsoftmax(x, w1, b1, w2, b2, nonlinearity=nonlinearity,
                         block_batch=128)
    out = jax.block_until_ready(out)
    assert out.shape == (batch, output_size)
    assert jnp.allclose(out, ref, atol=1e-5), "f32 path mismatch vs reference"

    # bf16 MXU-operand path (weights/activations bf16-resident, f32 accum).
    # Looser tolerance is expected from bf16 operand rounding.
    out_bf16 = mlp_logsoftmax(x, w1, b1, w2, b2, nonlinearity=nonlinearity,
                              block_batch=128, matmul_dtype=jnp.bfloat16)
    out_bf16 = jax.block_until_ready(out_bf16)
    assert out_bf16.shape == (batch, output_size)
    assert jnp.allclose(out_bf16, ref, atol=1e-1), "bf16 path mismatch"

    print("KERNEL_OK")
</pallas_src>

<mosaic_0001>
module attributes {stable_mosaic.version = 11 : i64} {
  func.func @_mlp_logsoftmax_kernel(%arg0: i32, %arg1: memref<128x32xf32, #tpu.memory_space<vmem>>, %arg2: memref<32x128xf32, #tpu.memory_space<vmem>>, %arg3: memref<1x128xf32, #tpu.memory_space<vmem>>, %arg4: memref<128x128xf32, #tpu.memory_space<vmem>>, %arg5: memref<1x128xf32, #tpu.memory_space<vmem>>, %arg6: memref<128x128xf32, #tpu.memory_space<vmem>>) attributes {dimension_semantics = [#tpu.dimension_semantics<parallel>], iteration_bounds = array<i64: 2>, scalar_prefetch = 0 : i64, scratch_operands = 0 : i64, tpu.core_type = #tpu.core_type<tc>, window_params = [{transform_indices = @transform_0, window_bounds = array<i64: 128, 32>}, {pipeline_mode = #tpu.pipeline_mode<synchronous>, transform_indices = @transform_1, window_bounds = array<i64: 32, 128>}, {pipeline_mode = #tpu.pipeline_mode<synchronous>, transform_indices = @transform_2, window_bounds = array<i64: 1, 128>}, {pipeline_mode = #tpu.pipeline_mode<synchronous>, transform_indices = @transform_3, window_bounds = array<i64: 128, 128>}, {pipeline_mode = #tpu.pipeline_mode<synchronous>, transform_indices = @transform_4, window_bounds = array<i64: 1, 128>}, {transform_indices = @transform_5, window_bounds = array<i64: 128, 128>}]} {
    %c0 = arith.constant 0 : index
    %c0_0 = arith.constant 0 : index
    %0 = vector.load %arg1[%c0, %c0_0] : memref<128x32xf32, #tpu.memory_space<vmem>>, vector<128x32xf32>
    %c0_1 = arith.constant 0 : index
    %c0_2 = arith.constant 0 : index
    %1 = vector.load %arg2[%c0_1, %c0_2] : memref<32x128xf32, #tpu.memory_space<vmem>>, vector<32x128xf32>
    %cst = arith.constant dense<0.000000e+00> : vector<128x128xf32>
    %2 = tpu.matmul %0, %1, %cst {dimension_numbers = #tpu.dot_dimension_numbers<[1], [0], [0], [1], [0, 0, 1, 1], [], []>} : vector<128x32xf32>, vector<32x128xf32>, vector<128x128xf32> -> vector<128x128xf32>
    %c0_3 = arith.constant 0 : index
    %c0_4 = arith.constant 0 : index
    %3 = vector.load %arg3[%c0_3, %c0_4] : memref<1x128xf32, #tpu.memory_space<vmem>>, vector<1x128xf32>
    %4 = vector.broadcast %3 : vector<1x128xf32> to vector<128x128xf32>
    %5 = arith.addf %2, %4 : vector<128x128xf32>
    %6 = math.tanh %5 : vector<128x128xf32>
    %c0_5 = arith.constant 0 : index
    %c0_6 = arith.constant 0 : index
    %7 = vector.load %arg4[%c0_5, %c0_6] : memref<128x128xf32, #tpu.memory_space<vmem>>, vector<128x128xf32>
    %cst_7 = arith.constant dense<0.000000e+00> : vector<128x128xf32>
    %8 = tpu.matmul %6, %7, %cst_7 {dimension_numbers = #tpu.dot_dimension_numbers<[1], [0], [0], [1], [0, 0, 1, 1], [], []>} : vector<128x128xf32>, vector<128x128xf32>, vector<128x128xf32> -> vector<128x128xf32>
    %c0_8 = arith.constant 0 : index
    %c0_9 = arith.constant 0 : index
    %9 = vector.load %arg5[%c0_8, %c0_9] : memref<1x128xf32, #tpu.memory_space<vmem>>, vector<1x128xf32>
    %10 = vector.broadcast %9 : vector<1x128xf32> to vector<128x128xf32>
    %11 = arith.addf %8, %10 : vector<128x128xf32>
    %cst_10 = arith.constant dense<0xFF800000> : vector<128xf32>
    %12 = vector.multi_reduction <maximumf>, %11, %cst_10 [1] : vector<128x128xf32> to vector<128xf32>
    %13 = vector.shape_cast %12 : vector<128xf32> to vector<128x1xf32>
    %14 = vector.broadcast %13 : vector<128x1xf32> to vector<128x128xf32>
    %15 = arith.subf %11, %14 : vector<128x128xf32>
    %16 = math.exp %15 : vector<128x128xf32>
    %cst_11 = arith.constant dense<0.000000e+00> : vector<128xf32>
    %17 = vector.multi_reduction <add>, %16, %cst_11 [1] : vector<128x128xf32> to vector<128xf32>
    %18 = vector.shape_cast %17 : vector<128xf32> to vector<128x1xf32>
    %19 = math.log %18 : vector<128x1xf32>
    %20 = vector.broadcast %19 : vector<128x1xf32> to vector<128x128xf32>
    %21 = arith.subf %15, %20 : vector<128x128xf32>
    %c0_12 = arith.constant 0 : index
    %c0_13 = arith.constant 0 : index
    %22 = vector.load %arg6[%c0_12, %c0_13] : memref<128x128xf32, #tpu.memory_space<vmem>>, vector<128x128xf32>
    tpu.vector_store %arg6[%c0_12, %c0_13], %21 {strides = array<i32>} : memref<128x128xf32, #tpu.memory_space<vmem>>, vector<128x128xf32>,
    return
  }
  func.func @transform_0(%arg0: i32) -> (i32, i32) {
    %c0_i32 = arith.constant 0 : i32
    %c0_i32_0 = arith.constant 0 : i32
    return %arg0, %c0_i32 : i32, i32
  }
  func.func @transform_1(%arg0: i32) -> (i32, i32) {
    %c0_i32 = arith.constant 0 : i32
    %c0_i32_0 = arith.constant 0 : i32
    %c0_i32_1 = arith.constant 0 : i32
    return %c0_i32, %c0_i32_0 : i32, i32
  }
  func.func @transform_2(%arg0: i32) -> (i32, i32) {
    %c0_i32 = arith.constant 0 : i32
    %c0_i32_0 = arith.constant 0 : i32
    %c0_i32_1 = arith.constant 0 : i32
    return %c0_i32, %c0_i32_0 : i32, i32
  }
  func.func @transform_3(%arg0: i32) -> (i32, i32) {
    %c0_i32 = arith.constant 0 : i32
    %c0_i32_0 = arith.constant 0 : i32
    %c0_i32_1 = arith.constant 0 : i32
    return %c0_i32, %c0_i32_0 : i32, i32
  }
  func.func @transform_4(%arg0: i32) -> (i32, i32) {
    %c0_i32 = arith.constant 0 : i32
    %c0_i32_0 = arith.constant 0 : i32
    %c0_i32_1 = arith.constant 0 : i32
    return %c0_i32, %c0_i32_0 : i32, i32
  }
  func.func @transform_5(%arg0: i32) -> (i32, i32) {
    %c0_i32 = arith.constant 0 : i32
    %c0_i32_0 = arith.constant 0 : i32
    return %arg0, %c0_i32 : i32, i32
  }
}

</mosaic_0001>

<bundles_post_ra>
// kernel: tpu_custom_call.1
= control target key start
LH: loop header
LB: loop body
LE: loop exit
PB: predicated region body
PF: predicated region fallthrough
CT: control target
= control target key end

     0   :  { %10 = vsyncpa [#allocation3], 0  ;;  %s1622_s0 = inlined_call_operand.vmem [shape: f32[256,32], index: 0, kind: input, shape index: {}]   ;;  %s1623_s1 = inlined_call_operand.vmem [shape: f32[32,128], index: 1, kind: input, shape index: {}]   ;;  %s1624_s2 = inlined_call_operand.vmem [shape: f32[1,128], index: 2, kind: input, shape index: {}]   ;;  %s1625_s3 = inlined_call_operand.vmem [shape: f32[128,128], index: 3, kind: input, shape index: {}]   ;;  %s1626_s4 = inlined_call_operand.vmem [shape: f32[1,128], index: 4, kind: input, shape index: {}]   ;;  %s1627_s5 = inlined_call_operand.hbm [shape: f32[256,128], index: 5, kind: output, shape index: {}]  }
   0x1   :  { %12 = vsyncpa [#allocation3 + $0x1], 0  ;;  %s1318_s18 = smov 0   ;;  %s1320_s19 = smov 0  }
   0x2   :  { %s1322_s20 = smov 0   ;;  %s1324_s21 = smov 0  }
   0x3 LB: > { %s1339_s22 = sadd.s32 4294967295, %s1283_s21   ;;  %s883_s23 = sadd.s32 4294967294, %s1283_s21   ;;  %s1283_s21 = sphi %s1324_s21, %s1633_s21   ;;  %s1279_s20 = sphi %s1322_s20, %s1632_s20   ;;  %s1275_s19 = sphi %s1320_s19, %s1631_s19   ;;  %s1271_s18 = sphi %s1318_s18, %s1630_s18  }
   0x4   : > { %s1343_s24 = sadd.s32 1, %s1283_s21   ;;  %s135_s25 = sadd.s32 1, %s1279_s20 }
   0x5   : > { %s132_s26 = ssub.s32 %s1283_s21, %s1343_s24  ;;  %p145_p0 = scmp.ne.s32.totalorder %s1279_s20, %s1275_s19 }
   0x6   : > { %p133_p1 = scmp.eq.s32.totalorder %s132_s26, 0  ;;  %p146_p2 = scmp.eq.s32.totalorder %s1339_s22, 1 }
   0x7   : > { %p151_p3 = scmp.ne.s32.totalorder %s1275_s19, %s1271_s18  ;;  %p152_p4 = scmp.eq.s32.totalorder %s883_s23, 1 }
   0x8   : > { %s1354_s27 = scalar_select %p133_p1, %s1279_s20, %s135_s25  }
   0x9   : > { %p1356_p5 = por %p146_p2, %p145_p0  ;;  %p1360_p6 = por %p152_p4, %p151_p3 }
   0xa   : > { %p886_p7 = scmp.ge.s32.totalorder %s1283_s21, 1  ;;  %p191_p8 = scmp.lt.s32.totalorder %s1283_s21, 3 }
   0xc   : > { %p192_p9 = pnand %p886_p7, %p191_p8 }
   0xd   : > { %s888_s9 = sshll.u32 (!%p192_p9), %s1339_s22, 4  ;;  %s216_s6 = sand.u32 (!%p192_p9), 1, %s1275_s19  }
   0xe   : > { %195 = sbr.rel (%p192_p9) target bundleno = 794 (0x31a), region = 40  ;;  %p220_p10 = scmp.lt.s32.totalorder (!%p192_p9), %s888_s9, 31 }
   0xf   : > { %s1285_s15 = smov (!%p192_p9), [#allocation2]  }
  0x10   : > { %s1227_s16 = sshll.u32 (!%p192_p9), %s1285_s15, 4  ;;  %s1228_s16 = int_to_ptr.vmem [resolvable:$false] %s1227_s16 }
  0x11   : > { %s1229_s17 = scalar_lea.vmem (!%p192_p9), %s1228_s16, 4096 }
  0x13   : > { %v245_v0 = vld [vmem:[%s1623_s1 + $0x18] sm:$0xff]  ;;  %v244_v1 = vld [vmem:[%s1623_s1 + $0x10] sm:$0xff]  ;;  %v243_v3 = vld [vmem:[%s1623_s1 + $0x8] sm:$0xff]  ;;  %s1635_s9 = smov (!%p220_p10, %s888_s9), 31  ;;  %vm253_vm0 = vcmask 261120  }
  0x14   : > { %966 = vmatprep.subr.mxu0 %v245_v0  ;;  %v478_v2 = vld [vmem:[%s1625_s3 + $0x78] sm:$0xff]  ;;  %v477_v4 = vld [vmem:[%s1625_s3 + $0x70] sm:$0xff]  ;;  %v242_v5 = vld [vmem:[%s1623_s1] sm:$0xff]  ;;  %s889_s23 = sshll.u32 %s1635_s9, 3  ;;  %s913_s9 = sshll.u32 %s1339_s22, 11 }
  0x15   : > { %967 = vmatpush3.msra.mxu0 %v245_v0  ;;  %1054 = vmatprep.subr.mxu1 %v478_v2  ;;  %v476_v6 = vld [vmem:[%s1625_s3 + $0x68] sm:$0xff]  ;;  %s1391_s7 = scalar_lea.vmem %s1622_s0, %s889_s23  ;;  %v475_v11 = vld [vmem:[%s1625_s3 + $0x60] sm:$0xff]  ;;  %v474_v14 = vld [vmem:[%s1625_s3 + $0x58] sm:$0xff]  ;;  %s1573_s13 = scalar_lea.hbm %s1627_s5, %s913_s9 }
  0x16   : > { %968 = vmatprep.subr.mxu0 %v244_v1  ;;  %1070 = vmatpush3.msra.mxu1 %v478_v2  ;;  %v226_v7 = vld [vmem:[%s1391_s7] sm:$0xff]  ;;  %v227_v8 = vld [vmem:[%s1391_s7 + $0x8] sm:$0xff]  ;;  %v228_v9 = vld [vmem:[%s1391_s7 + $0x10] sm:$0xff]  ;;  %s1582_s22 = scalar_lea.sflag [#allocation3], %s216_s6 }
  0x17   : > { %969 = vmatpush3.msra.mxu0 %v244_v1  ;;  %1055 = vmatprep.subr.mxu1 %v477_v4  ;;  %v229_v10 = vld [vmem:[%s1391_s7 + $0x18] sm:$0xff]  ;;  %v230_v12 = vld [vmem:[%s1391_s7 + $0x20] sm:$0xff]  ;;  %v231_v13 = vld [vmem:[%s1391_s7 + $0x28] sm:$0xff] }
  0x18   : > { %970 = vmatprep.subr.mxu0 %v243_v3  ;;  %1071 = vmatpush3.msra.mxu1 %v477_v4  ;;  %v232_v15 = vld [vmem:[%s1391_s7 + $0x30] sm:$0xff]  ;;  %v233_v17 = vld [vmem:[%s1391_s7 + $0x38] sm:$0xff]  ;;  %v472_v18 = vld [vmem:[%s1625_s3 + $0x48] sm:$0xff] }
  0x19   : > { %971 = vmatpush3.msra.mxu0 %v243_v3  ;;  %1056 = vmatprep.subr.mxu1 %v476_v6  ;;  %v473_v16 = vld [vmem:[%s1625_s3 + $0x50] sm:$0xff]  ;;  %v234_v19 = vld [vmem:[%s1391_s7 + $0x40] sm:$0xff]  ;;  %v235_v20 = vld [vmem:[%s1391_s7 + $0x48] sm:$0xff] }
  0x1a   : > { %972 = vmatprep.subr.mxu0 %v242_v5  ;;  %1072 = vmatpush3.msra.mxu1 %v476_v6  ;;  %v236_v21 = vld [vmem:[%s1391_s7 + $0x50] sm:$0xff]  ;;  %v237_v22 = vld [vmem:[%s1391_s7 + $0x58] sm:$0xff]  ;;  %v238_v23 = vld [vmem:[%s1391_s7 + $0x60] sm:$0xff] }
  0x1b   : > { %973 = vmatpush3.msra.mxu0 %v242_v5  ;;  %974 = vmatprep.mubr.msk.f32.mxu0 %vm253_vm0, %v226_v7  ;;  %v239_v24 = vld [vmem:[%s1391_s7 + $0x68] sm:$0xff]  ;;  %v240_v25 = vld [vmem:[%s1391_s7 + $0x70] sm:$0xff]  ;;  %v241_v26 = vld [vmem:[%s1391_s7 + $0x78] sm:$0xff]  ;;  %s887_s7 = sshll.u32 %s216_s6, 7 }
  0x1c   : > { %975 = vmatmul.mubr.msk.f32.vlgmr.msra.gmra.mxu0 %vm253_vm0, %v227_v8  ;;  %998 = vmatprep.subr.mxu0 %v478_v2  ;;  %v471_v27 = vld [vmem:[%s1625_s3 + $0x40] sm:$0xff]  ;;  %v470_v28 = vld [vmem:[%s1625_s3 + $0x38] sm:$0xff]  ;;  %v469_v29 = vld [vmem:[%s1625_s3 + $0x30] sm:$0xff]  ;;  %s1538_s8 = scalar_lea.vmem [#allocation2], %s887_s7 }
  0x1d   : > { %977 = vmatprep.mubr.msk.f32.mxu0 %vm253_vm0, %v228_v9  ;;  %999 = vmatpush3.msra.mxu0 %v478_v2  ;;  %v468_v30 = vld [vmem:[%s1625_s3 + $0x28] sm:$0xff]  ;;  %v467_v31 = vld [vmem:[%s1625_s3 + $0x20] sm:$0xff]  ;;  %v466_v32 = vld [vmem:[%s1625_s3 + $0x18] sm:$0xff]  ;;  %s821_s10 = sshll.u32 %s1538_s8, 4  ;;  %s1575_s10 = int_to_ptr.vmem [resolvable:$true] %s821_s10 }
  0x1e   : > { %1000 = vmatprep.subr.mxu0 %v477_v4  ;;  %1057 = vmatprep.subr.mxu1 %v475_v11  ;;  %v465_v33 = vld [vmem:[%s1625_s3 + $0x10] sm:$0xff]  ;;  %v464_v34 = vld [vmem:[%s1625_s3 + $0x8] sm:$0xff]  ;;  %v463_v35 = vld [vmem:[%s1625_s3] sm:$0xff]  ;;  %s1223_s14 = scalar_lea.vmem %s1575_s10, 2048  ;;  %p1230_p0 = scmp.lt.s32.totalorder %s1575_s10, %s1228_s16 }
  0x1f   : > { %1001 = vmatpush3.msra.mxu0 %v477_v4  ;;  %1073 = vmatpush3.msra.mxu1 %v475_v11  ;;  %v890_v36 = vld [vmem:[%s1624_s2] ss:$0 sm:$0xff]  ;;  %p1224_p11 = scmp.ne.s32.totalorder %s1575_s10, %s1223_s14  ;;  %p1231_p1 = scmp.lt.s32.totalorder %s1229_s17, %s1223_s14 }
  0x20   : > { %978 = vmatmul.mubr.msk.f32.gmra.mxu0 %vm253_vm0, %v229_v10  ;;  %1002 = vmatprep.subr.mxu0 %v476_v6 }
  0x21   : > { %980 = vmatprep.mubr.msk.f32.mxu0 %vm253_vm0, %v230_v12  ;;  %1003 = vmatpush3.msra.mxu0 %v476_v6  ;;  %p1225_p12 = pnand %p1224_p11, %p1356_p5  ;;  %p1232_p2 = por %p1231_p1, %p1230_p0 }
  0x22   : > { %1004 = vmatprep.subr.mxu0 %v475_v11  ;;  %1058 = vmatprep.subr.mxu1 %v474_v14 }
  0x23   : > { %1005 = vmatpush3.msra.mxu0 %v475_v11  ;;  %1074 = vmatpush3.msra.mxu1 %v474_v14  ;;  %p1226_p13 = pneg %p1225_p12 }
  0x24   : > { %981 = vmatmul.mubr.msk.f32.gmra.mxu0 %vm253_vm0, %v231_v13  ;;  %1006 = vmatprep.subr.mxu0 %v474_v14 }
  0x25   : > { %983 = vmatprep.mubr.msk.f32.mxu0 %vm253_vm0, %v232_v15  ;;  %1007 = vmatpush3.msra.mxu0 %v474_v14  ;;  %p1233_p3 = pnand %p1232_p2, %p1226_p13 }
  0x26   : > { %1008 = vmatprep.subr.mxu0 %v473_v16  ;;  %1059 = vmatprep.subr.mxu1 %v473_v16 }
  0x27   : > { %1009 = vmatpush3.msra.mxu0 %v473_v16  ;;  %1075 = vmatpush3.msra.mxu1 %v473_v16 }
  0x28   : > { %984 = vmatmul.mubr.msk.f32.gmra.mxu0 %vm253_vm0, %v233_v17  ;;  %1010 = vmatprep.subr.mxu0 %v472_v18 }
  0x29   : > { %986 = vmatprep.mubr.msk.f32.mxu0 %vm253_vm0, %v234_v19  ;;  %1011 = vmatpush3.msra.mxu0 %v472_v18 }
  0x2a   : > { %1060 = vmatprep.subr.mxu1 %v472_v18  ;;  %1012 = vmatprep.subr.mxu0 %v471_v27 }
  0x2b   : > { %1076 = vmatpush3.msra.mxu1 %v472_v18  ;;  %1013 = vmatpush3.msra.mxu0 %v471_v27 }
  0x2c   : > { %987 = vmatmul.mubr.msk.f32.gmra.mxu0 %vm253_vm0, %v235_v20  ;;  %1061 = vmatprep.subr.mxu1 %v471_v27 }
  0x2d   : > { %989 = vmatprep.mubr.msk.f32.mxu0 %vm253_vm0, %v236_v21  ;;  %1077 = vmatpush3.msra.mxu1 %v471_v27  ;;  %v907_v21 = vld [vmem:[%s1626_s4] ss:$0 sm:$0xff] }
  0x2e   : > { %1014 = vmatprep.subr.mxu0 %v470_v28  ;;  %1062 = vmatprep.subr.mxu1 %v470_v28 }
  0x2f   : > { %1015 = vmatpush3.msra.mxu0 %v470_v28  ;;  %1078 = vmatpush3.msra.mxu1 %v470_v28 }
  0x30   : > { %990 = vmatmul.mubr.msk.f32.gmra.mxu0 %vm253_vm0, %v237_v22  ;;  %1016 = vmatprep.subr.mxu0 %v469_v29 }
  0x31   : > { %992 = vmatprep.mubr.msk.f32.mxu0 %vm253_vm0, %v238_v23  ;;  %1063 = vmatprep.subr.mxu1 %v469_v29 }
  0x32   : > { %1017 = vmatpush3.msra.mxu0 %v469_v29  ;;  %1079 = vmatpush3.msra.mxu1 %v469_v29 }
  0x33   : > { %1018 = vmatprep.subr.mxu0 %v468_v30  ;;  %1064 = vmatprep.subr.mxu1 %v468_v30 }
  0x34   : > { %993 = vmatmul.mubr.msk.f32.gmra.mxu0 %vm253_vm0, %v239_v24  ;;  %1080 = vmatpush3.msra.mxu1 %v468_v30 }
  0x35   : > { %995 = vmatprep.mubr.msk.f32.mxu0 %vm253_vm0, %v240_v25  ;;  %1019 = vmatpush3.msra.mxu0 %v468_v30 }
  0x36   : > { %1020 = vmatprep.subr.mxu0 %v467_v31  ;;  %1065 = vmatprep.subr.mxu1 %v467_v31 }
  0x37   : > { %1021 = vmatpush3.msra.mxu0 %v467_v31  ;;  %1081 = vmatpush3.msra.mxu1 %v467_v31 }
  0x38   : > { %996 = vmatmul.mubr.msk.f32.gmra.mxu0 %vm253_vm0, %v241_v26  ;;  %1022 = vmatprep.subr.mxu0 %v466_v32 }
  0x39   : > { %1066 = vmatprep.subr.mxu1 %v466_v32  ;;  %1023 = vmatpush3.msra.mxu0 %v466_v32 }
  0x3a   : > { %1082 = vmatpush3.msra.mxu1 %v466_v32  ;;  %1024 = vmatprep.subr.mxu0 %v465_v33 }
  0x3b   : > { %1067 = vmatprep.subr.mxu1 %v465_v33  ;;  %1025 = vmatpush3.msra.mxu0 %v465_v33 }
  0x3c   : > { %1083 = vmatpush3.msra.mxu1 %v465_v33  ;;  %1026 = vmatprep.subr.mxu0 %v464_v34 }
  0x3d   : > { %1068 = vmatprep.subr.mxu1 %v464_v34  ;;  %1027 = vmatpush3.msra.mxu0 %v464_v34 }
  0x3e   : > { %1084 = vmatpush3.msra.mxu1 %v464_v34  ;;  %1028 = vmatprep.subr.mxu0 %v463_v35 }
  0x3f   : > { %1069 = vmatprep.subr.mxu1 %v463_v35  ;;  %1029 = vmatpush3.msra.mxu0 %v463_v35 }
  0x40   : > { %1085 = vmatpush3.msra.mxu1 %v463_v35 }
  0xdc   : > { %v976_v37 = vpop.f32.mrf.mxu0 }
  0xdd   : > { %v374_v38 = vadd.f32 %v976_v37, %v890_v36 }
  0xde   : > { %v368_v39 = vpop.f32.mrf.mxu0 }
  0xdf   : > { %v369_v40 = vadd.f32 %v890_v36, %v368_v39 }
  0xe0   : > { %v979_v41 = vpop.f32.mrf.mxu0 }
  0xe1   : > { %1127 = vtanh.f32 %v369_v40  ;;  %v384_v42 = vadd.f32 %v979_v41, %v890_v36 }
  0xe2   : > { %1129 = vtanh.f32 %v374_v38  ;;  %v378_v43 = vpop.f32.mrf.mxu0 }
  0xe3   : > { %v379_v44 = vadd.f32 %v890_v36, %v378_v43 }
  0xe4   : > { %v982_v45 = vpop.f32.mrf.mxu0 }
  0xe5   : > { %1131 = vtanh.f32 %v379_v44  ;;  %v394_v46 = vadd.f32 %v982_v45, %v890_v36 }
  0xe6   : > { %1133 = vtanh.f32 %v384_v42  ;;  %v388_v47 = vpop.f32.mrf.mxu0 }
  0xe7   : > { %v389_v48 = vadd.f32 %v890_v36, %v388_v47  ;;  %1135 = vtanh.f32 %v394_v46 }
  0xe8   : > { %v985_v49 = vpop.f32.mrf.mxu0 }
  0xe9   : > { %1137 = vtanh.f32 %v389_v48  ;;  %v404_v50 = vadd.f32 %v985_v49, %v890_v36 }
  0xea   : > { %v398_v51 = vpop.f32.mrf.mxu0 }
  0xeb   : > { %v399_v52 = vadd.f32 %v890_v36, %v398_v51  ;;  %1139 = vtanh.f32 %v404_v50 }
  0xec   : > { %v988_v53 = vpop.f32.mrf.mxu0 }
  0xed   : > { %1141 = vtanh.f32 %v399_v52  ;;  %v414_v54 = vadd.f32 %v988_v53, %v890_v36 }
  0xee   : > { %v1128_v55 = vpop.eup %1127  ;;  %v408_v56 = vpop.f32.mrf.mxu0 }
  0xef   : > { %v1130_v57 = vpop.eup %1129  ;;  %v409_v58 = vadd.f32 %v890_v36, %v408_v56  ;;  %1030 = vmatprep.mubr.f32.mxu0 %v1128_v55  ;;  %1143 = vtanh.f32 %v414_v54 }
  0xf0   : > { %v991_v59 = vpop.f32.mrf.mxu0  ;;  %1031 = vmatmul.mubr.f32.vlgmr.msra.gmra.mxu0 %v1130_v57 }
  0xf1   : > { %1145 = vtanh.f32 %v409_v58  ;;  %v424_v60 = vadd.f32 %v991_v59, %v890_v36 }
  0xf2   : > { %v1132_v61 = vpop.eup %1131  ;;  %v418_v62 = vpop.f32.mrf.mxu0 }
  0xf3   : > { %v1134_v63 = vpop.eup %1133  ;;  %v419_v0 = vadd.f32 %v890_v36, %v418_v62  ;;  %1033 = vmatprep.mubr.f32.mxu0 %v1132_v61  ;;  %1147 = vtanh.f32 %v424_v60 }
  0xf4   : > { %v994_v1 = vpop.f32.mrf.mxu0  ;;  %1034 = vmatmul.mubr.f32.gmra.mxu0 %v1134_v63  ;;  %v1136_v2 = vpop.eup %1135 }
  0xf5   : > { %1149 = vtanh.f32 %v419_v0  ;;  %v434_v3 = vadd.f32 %v994_v1, %v890_v36 }
  0xf6   : > { %v1138_v4 = vpop.eup %1137  ;;  %v428_v5 = vpop.f32.mrf.mxu0 }
  0xf7   : > { %v429_v6 = vadd.f32 %v890_v36, %v428_v5  ;;  %1036 = vmatprep.mubr.f32.mxu0 %v1138_v4  ;;  %1151 = vtanh.f32 %v434_v3 }
  0xf8   : > { %v997_v7 = vpop.f32.mrf.mxu0  ;;  %1037 = vmatmul.mubr.f32.gmra.mxu0 %v1136_v2  ;;  %v1140_v8 = vpop.eup %1139 }
  0xf9   : > { %1153 = vtanh.f32 %v429_v6  ;;  %v444_v9 = vadd.f32 %v997_v7, %v890_v36 }
  0xfa   : > { %v1142_v10 = vpop.eup %1141  ;;  %v438_v11 = vpop.f32.mrf.mxu0 }
  0xfb   : > { %v439_v12 = vadd.f32 %v890_v36, %v438_v11  ;;  %1039 = vmatprep.mubr.f32.mxu1 %v1142_v10  ;;  %1155 = vtanh.f32 %v444_v9 }
  0xfc   : > { %1040 = vmatmul.mubr.f32.vlgmr.msra.gmra.mxu1 %v1140_v8  ;;  %v1144_v13 = vpop.eup %1143 }
  0xfd   : > { %1157 = vtanh.f32 %v439_v12 }
  0xfe   : > { %v1146_v14 = vpop.eup %1145 }
  0xff   : > { %1042 = vmatprep.mubr.f32.mxu1 %v1146_v14 }
 0x100   : > { %1043 = vmatmul.mubr.f32.gmra.mxu1 %v1144_v13  ;;  %v1148_v15 = vpop.eup %1147 }
 0x102   : > { %v1150_v16 = vpop.eup %1149 }
 0x103   : > { %1045 = vmatprep.mubr.f32.mxu1 %v1150_v16 }
 0x104   : > { %1046 = vmatmul.mubr.f32.gmra.mxu1 %v1148_v15  ;;  %v1152_v17 = vpop.eup %1151 }
 0x106   : > { %v1154_v18 = vpop.eup %1153 }
 0x107   : > { %1048 = vmatprep.mubr.f32.mxu1 %v1154_v18 }
 0x108   : > { %1049 = vmatmul.mubr.f32.gmra.mxu1 %v1152_v17  ;;  %v1156_v19 = vpop.eup %1155 }
 0x10a   : > { %v1158_v20 = vpop.eup %1157 }
 0x10b   : > { %1051 = vmatprep.mubr.f32.mxu1 %v1158_v20 }
 0x10c   : > { %1052 = vmatmul.mubr.f32.gmra.mxu1 %v1156_v19 }
 0x1b0   : > { %v1032_v22 = vpop.f32.mrf.mxu0 }
 0x1b1   : > { %v558_v23 = vadd.f32 %v1032_v22, %v907_v21 }
 0x1b2   : > { %v552_v24 = vpop.f32.mrf.mxu0 }
 0x1b3   : > { %633 = vmax.xlane.f32.xlu0 %v558_v23  ;;  %v553_v26 = vadd.f32 %v907_v21, %v552_v24 }
 0x1b4   : > { %v1035_v25 = vpop.f32.mrf.mxu0 }
 0x1b5   : > { %v568_v27 = vadd.f32 %v1035_v25, %v907_v21 }
 0x1b6   : > { %v562_v28 = vpop.f32.mrf.mxu0 }
 0x1b7   : > { %637 = vmax.xlane.f32.xlu1 %v568_v27  ;;  %631 = vmax.xlane.f32.xlu0 %v553_v26  ;;  %v563_v30 = vadd.f32 %v907_v21, %v562_v28 }
 0x1b8   : > { %v1038_v29 = vpop.f32.mrf.mxu0 }
 0x1b9   : > { %v578_v34 = vadd.f32 %v1038_v29, %v907_v21 }
 0x1ba   : > { %v572_v31 = vpop.f32.mrf.mxu0 }
 0x1bb   : > { %v573_v32 = vadd.f32 %v907_v21, %v572_v31  ;;  %635 = vmax.xlane.f32.xlu1 %v563_v30 }
 0x1bc   : > { %v1041_v33 = vpop.f32.mrf.mxu1 }
 0x1bd   : > { %639 = vmax.xlane.f32.xlu0 %v573_v32  ;;  %v588_v38 = vadd.f32 %v1041_v33, %v907_v21 }
 0x1be   : > { %v582_v35 = vpop.f32.mrf.mxu1 }
 0x1bf   : > { %v583_v36 = vadd.f32 %v907_v21, %v582_v35  ;;  %641 = vmax.xlane.f32.xlu1 %v578_v34 }
 0x1c0   : > { %v1044_v37 = vpop.f32.mrf.mxu1 }
 0x1c1   : > { %643 = vmax.xlane.f32.xlu0 %v583_v36  ;;  %v598_v42 = vadd.f32 %v1044_v37, %v907_v21 }
 0x1c2   : > { %v592_v39 = vpop.f32.mrf.mxu1 }
 0x1c3   : > { %v593_v40 = vadd.f32 %v907_v21, %v592_v39  ;;  %645 = vmax.xlane.f32.xlu1 %v588_v38 }
 0x1c4   : > { %v1047_v41 = vpop.f32.mrf.mxu1 }
 0x1c5   : > { %647 = vmax.xlane.f32.xlu0 %v593_v40  ;;  %v608_v46 = vadd.f32 %v1047_v41, %v907_v21 }
 0x1c6   : > { %v602_v43 = vpop.f32.mrf.mxu1 }
 0x1c7   : > { %v603_v44 = vadd.f32 %v907_v21, %v602_v43  ;;  %649 = vmax.xlane.f32.xlu1 %v598_v42 }
 0x1c8   : > { %v1050_v45 = vpop.f32.mrf.mxu1 }
 0x1c9   : > { %651 = vmax.xlane.f32.xlu0 %v603_v44  ;;  %v1472_v50 = vadd.f32 %v1050_v45, %v907_v21 }
 0x1ca   : > { %v612_v47 = vpop.f32.mrf.mxu1 }
 0x1cb   : > { %v1470_v48 = vadd.f32 %v907_v21, %v612_v47  ;;  %653 = vmax.xlane.f32.xlu1 %v608_v46 }
 0x1cc   : > { %v1053_v49 = vpop.f32.mrf.mxu1 }
 0x1cd   : > { %655 = vmax.xlane.f32.xlu0 %v1470_v48  ;;  %v1478_v53 = vadd.f32 %v1053_v49, %v907_v21 }
 0x1ce   : > { %v622_v51 = vpop.f32.mrf.mxu1 }
 0x1cf   : > { %v1475_v52 = vadd.f32 %v907_v21, %v622_v51  ;;  %657 = vmax.xlane.f32.xlu1 %v1472_v50 }
 0x1d1   : > { %659 = vmax.xlane.f32.xlu0 %v1475_v52 }
 0x1d3   : > { %661 = vmax.xlane.f32.xlu1 %v1478_v53 }
 0x23c   : > { %v634_v54 = vpop.xlane.xlu0 %633 }
 0x23d   : > { %v1482_v55 = vsub.f32 %v558_v23, %v634_v54 }
 0x23f   : > { %v681_v56 = vmul.f32 1.442695, %v1482_v55 }
 0x240   : > { %v638_v57 = vpop.xlane.xlu1 %637  ;;  %v632_v58 = vpop.xlane.xlu0 %631 }
 0x241   : > { %1159 = vpow2.f32 %v681_v56  ;;  %v1485_v59 = vsub.f32 %v568_v27, %v638_v57  ;;  %v1487_v60 = vsub.f32 %v553_v26, %v632_v58 }
 0x243   : > { %v685_v61 = vmul.f32 1.442695, %v1485_v59  ;;  %v679_v62 = vmul.f32 1.442695, %v1487_v60 }
 0x244   : > { %v636_v63 = vpop.xlane.xlu1 %635 }
 0x245   : > { %1161 = vpow2.f32 %v685_v61  ;;  %v1491_v0 = vsub.f32 %v563_v30, %v636_v63 }
 0x246   : > { %1163 = vpow2.f32 %v679_v62  ;;  %v640_v1 = vpop.xlane.xlu0 %639 }
 0x247   : > { %v683_v2 = vmul.f32 1.442695, %v1491_v0  ;;  %v1494_v3 = vsub.f32 %v573_v32, %v640_v1 }
 0x248   : > { %v642_v4 = vpop.xlane.xlu1 %641 }
 0x249   : > { %1165 = vpow2.f32 %v683_v2  ;;  %v1496_v5 = vsub.f32 %v578_v34, %v642_v4  ;;  %v687_v6 = vmul.f32 1.442695, %v1494_v3 }
 0x24a   : > { %v644_v7 = vpop.xlane.xlu0 %643 }
 0x24b   : > { %v689_v8 = vmul.f32 1.442695, %v1496_v5  ;;  %v1500_v9 = vsub.f32 %v583_v36, %v644_v7 }
 0x24c   : > { %v646_v10 = vpop.xlane.xlu1 %645 }
 0x24d   : > { %1167 = vpow2.f32 %v689_v8  ;;  %v1502_v11 = vsub.f32 %v588_v38, %v646_v10  ;;  %v691_v13 = vmul.f32 1.442695, %v1500_v9 }
 0x24e   : > { %v1160_v12 = vpop.eup %1159  ;;  %1169 = vpow2.f32 %v687_v6  ;;  %v648_v14 = vpop.xlane.xlu0 %647 }
 0x24f   : > { %v693_v15 = vmul.f32 1.442695, %v1502_v11  ;;  %v1506_v16 = vsub.f32 %v593_v40, %v648_v14  ;;  %713 = vadd.xlane.f32.xlu1 %v1160_v12 }
 0x250   : > { %v650_v17 = vpop.xlane.xlu1 %649 }
 0x251   : > { %1171 = vpow2.f32 %v693_v15  ;;  %v1508_v18 = vsub.f32 %v598_v42, %v650_v17  ;;  %v695_v20 = vmul.f32 1.442695, %v1506_v16 }
 0x252   : > { %v1162_v19 = vpop.eup %1161  ;;  %1173 = vpow2.f32 %v691_v13  ;;  %v652_v21 = vpop.xlane.xlu0 %651 }
 0x253   : > { %v1164_v22 = vpop.eup %1163  ;;  %v697_v23 = vmul.f32 1.442695, %v1508_v18  ;;  %v1512_v24 = vsub.f32 %v603_v44, %v652_v21  ;;  %717 = vadd.xlane.f32.xlu1 %v1162_v19 }
 0x254   : > { %711 = vadd.xlane.f32.xlu0 %v1164_v22  ;;  %v654_v25 = vpop.xlane.xlu1 %653 }
 0x255   : > { %1175 = vpow2.f32 %v697_v23  ;;  %v1514_v26 = vsub.f32 %v608_v46, %v654_v25  ;;  %v699_v28 = vmul.f32 1.442695, %v1512_v24 }
 0x256   : > { %v1166_v27 = vpop.eup %1165  ;;  %1177 = vpow2.f32 %v695_v20  ;;  %v656_v29 = vpop.xlane.xlu0 %655 }
 0x257   : > { %v701_v30 = vmul.f32 1.442695, %v1514_v26  ;;  %v1519_v31 = vsub.f32 %v1470_v48, %v656_v29 }
 0x258   : > { %715 = vadd.xlane.f32.xlu0 %v1166_v27  ;;  %v658_v32 = vpop.xlane.xlu1 %657 }
 0x259   : > { %1179 = vpow2.f32 %v701_v30  ;;  %v1522_v33 = vsub.f32 %v1472_v50, %v658_v32  ;;  %v703_v35 = vmul.f32 1.442695, %v1519_v31 }
 0x25a   : > { %v1168_v34 = vpop.eup %1167  ;;  %1181 = vpow2.f32 %v699_v28  ;;  %v660_v36 = vpop.xlane.xlu0 %659 }
 0x25b   : > { %v1170_v37 = vpop.eup %1169  ;;  %v705_v38 = vmul.f32 1.442695, %v1522_v33  ;;  %v1527_v39 = vsub.f32 %v1475_v52, %v660_v36  ;;  %721 = vadd.xlane.f32.xlu1 %v1168_v34 }
 0x25c   : > { %719 = vadd.xlane.f32.xlu0 %v1170_v37  ;;  %v662_v40 = vpop.xlane.xlu1 %661 }
 0x25d   : > { %1183 = vpow2.f32 %v705_v38  ;;  %v1530_v41 = vsub.f32 %v1478_v53, %v662_v40  ;;  %v707_v43 = vmul.f32 1.442695, %v1527_v39 }
 0x25e   : > { %v1172_v42 = vpop.eup %1171  ;;  %1185 = vpow2.f32 %v703_v35 }
 0x25f   : > { %v1174_v44 = vpop.eup %1173  ;;  %v709_v45 = vmul.f32 1.442695, %v1530_v41  ;;  %725 = vadd.xlane.f32.xlu1 %v1172_v42 }
 0x260   : > { %723 = vadd.xlane.f32.xlu0 %v1174_v44 }
 0x261   : > { %1187 = vpow2.f32 %v709_v45 }
 0x262   : > { %v1176_v46 = vpop.eup %1175  ;;  %1189 = vpow2.f32 %v707_v43 }
 0x263   : > { %v1178_v47 = vpop.eup %1177  ;;  %729 = vadd.xlane.f32.xlu1 %v1176_v46 }
 0x264   : > { %727 = vadd.xlane.f32.xlu0 %v1178_v47 }
 0x266   : > { %v1180_v48 = vpop.eup %1179 }
 0x267   : > { %v1182_v49 = vpop.eup %1181  ;;  %733 = vadd.xlane.f32.xlu1 %v1180_v48 }
 0x268   : > { %731 = vadd.xlane.f32.xlu0 %v1182_v49 }
 0x26a   : > { %v1184_v50 = vpop.eup %1183 }
 0x26b   : > { %v1186_v51 = vpop.eup %1185  ;;  %737 = vadd.xlane.f32.xlu1 %v1184_v50 }
 0x26c   : > { %735 = vadd.xlane.f32.xlu0 %v1186_v51 }
 0x26e   : > { %v1188_v52 = vpop.eup %1187 }
 0x26f   : > { %v1190_v53 = vpop.eup %1189  ;;  %741 = vadd.xlane.f32.xlu1 %v1188_v52 }
 0x270   : > { %739 = vadd.xlane.f32.xlu0 %v1190_v53 }
 0x2d8   : > { %v714_v54 = vpop.xlane.xlu1 %713 }
 0x2d9   : > { %1191 = vlog2.f32 %v714_v54 }
 0x2dc   : > { %v718_v56 = vpop.xlane.xlu1 %717 }
 0x2dd   : > { %1193 = vlog2.f32 %v718_v56  ;;  %v712_v57 = vpop.xlane.xlu0 %711 }
 0x2de   : > { %1195 = vlog2.f32 %v712_v57 }
 0x2e1   : > { %v716_v58 = vpop.xlane.xlu0 %715 }
 0x2e2   : > { %1197 = vlog2.f32 %v716_v58 }
 0x2e4   : > { %v722_v61 = vpop.xlane.xlu1 %721 }
 0x2e5   : > { %1199 = vlog2.f32 %v722_v61  ;;  %v720_v62 = vpop.xlane.xlu0 %719 }
 0x2e6   : > { %v1192_v63 = vpop.eup %1191  ;;  %1201 = vlog2.f32 %v720_v62 }
 0x2e7   : > { %v746_v1 = vmul.f32 0.6931472, %v1192_v63 }
 0x2e8   : > { %v726_v2 = vpop.xlane.xlu1 %725 }
 0x2e9   : > { %v776_v4 = vsub.f32 %v1482_v55, %v746_v1  ;;  %1203 = vlog2.f32 %v726_v2  ;;  %v724_v6 = vpop.xlane.xlu0 %723 }
 0x2ea   : > { %v1194_v7 = vpop.eup %1193  ;;  %1205 = vlog2.f32 %v724_v6 }
 0x2eb   : > { %v1196_v8 = vpop.eup %1195  ;;  %792 = vst [vmem:[%s1538_s8 + $0x8] sm:$0xff] %v776_v4  ;;  %v750_v10 = vmul.f32 0.6931472, %v1194_v7 }
 0x2ec   : > { %v744_v12 = vmul.f32 0.6931472, %v1196_v8  ;;  %v730_v13 = vpop.xlane.xlu1 %729 }
 0x2ed   : > { %v778_v14 = vsub.f32 %v1485_v59, %v750_v10  ;;  %1207 = vlog2.f32 %v730_v13  ;;  %v728_v15 = vpop.xlane.xlu0 %727 }
 0x2ee   : > { %v775_v55 = vsub.f32 %v1487_v60, %v744_v12  ;;  %1209 = vlog2.f32 %v728_v15 }
 0x2ef   : > { %v1198_v17 = vpop.eup %1197  ;;  %794 = vst [vmem:[%s1538_s8 + $0x18] sm:$0xff] %v778_v14 }
 0x2f0   : > { %791 = vst [vmem:[%s1538_s8] sm:$0xff] %v775_v55  ;;  %v748_v19 = vmul.f32 0.6931472, %v1198_v17  ;;  %v734_v20 = vpop.xlane.xlu1 %733 }
 0x2f1   : > { %1211 = vlog2.f32 %v734_v20  ;;  %v732_v21 = vpop.xlane.xlu0 %731 }
 0x2f2   : > { %v1200_v22 = vpop.eup %1199  ;;  %v777_v23 = vsub.f32 %v1491_v0, %v748_v19  ;;  %1213 = vlog2.f32 %v732_v21 }
 0x2f3   : > { %v1202_v59 = vpop.eup %1201  ;;  %v754_v25 = vmul.f32 0.6931472, %v1200_v22 }
 0x2f4   : > { %793 = vst [vmem:[%s1538_s8 + $0x10] sm:$0xff] %v777_v23  ;;  %v752_v27 = vmul.f32 0.6931472, %v1202_v59  ;;  %v738_v28 = vpop.xlane.xlu1 %737 }
 0x2f5   : > { %v780_v60 = vsub.f32 %v1496_v5, %v754_v25  ;;  %1215 = vlog2.f32 %v738_v28  ;;  %v736_v29 = vpop.xlane.xlu0 %735 }
 0x2f6   : > { %v1204_v30 = vpop.eup %1203  ;;  %v779_v32 = vsub.f32 %v1494_v3, %v752_v27  ;;  %1217 = vlog2.f32 %v736_v29 }
 0x2f7   : > { %v1206_v34 = vpop.eup %1205  ;;  %796 = vst [vmem:[%s1538_s8 + $0x28] sm:$0xff] %v780_v60  ;;  %v758_v0 = vmul.f32 0.6931472, %v1204_v30 }
 0x2f8   : > { %795 = vst [vmem:[%s1538_s8 + $0x20] sm:$0xff] %v779_v32  ;;  %v756_v35 = vmul.f32 0.6931472, %v1206_v34  ;;  %v742_v36 = vpop.xlane.xlu1 %741 }
 0x2f9   : > { %v782_v37 = vsub.f32 %v1502_v11, %v758_v0  ;;  %1219 = vlog2.f32 %v742_v36  ;;  %v740_v5 = vpop.xlane.xlu0 %739 }
 0x2fa   : > { %v1208_v38 = vpop.eup %1207  ;;  %v781_v40 = vsub.f32 %v1500_v9, %v756_v35  ;;  %1221 = vlog2.f32 %v740_v5 }
 0x2fb   : > { %v1210_v42 = vpop.eup %1209  ;;  %798 = vst [vmem:[%s1538_s8 + $0x38] sm:$0xff] %v782_v37  ;;  %v762_v3 = vmul.f32 0.6931472, %v1208_v38 }
 0x2fc   : > { %797 = vst [vmem:[%s1538_s8 + $0x30] sm:$0xff] %v781_v40  ;;  %v760_v43 = vmul.f32 0.6931472, %v1210_v42 }
 0x2fd   : > { %v784_v44 = vsub.f32 %v1508_v18, %v762_v3 }
 0x2fe   : > { %v1212_v45 = vpop.eup %1211  ;;  %v783_v46 = vsub.f32 %v1506_v16, %v760_v43 }
 0x2ff   : > { %v1214_v11 = vpop.eup %1213  ;;  %800 = vst [vmem:[%s1538_s8 + $0x48] sm:$0xff] %v784_v44  ;;  %v766_v47 = vmul.f32 0.6931472, %v1212_v45 }
 0x300   : > { %799 = vst [vmem:[%s1538_s8 + $0x40] sm:$0xff] %v783_v46  ;;  %v764_v9 = vmul.f32 0.6931472, %v1214_v11 }
 0x301   : > { %v786_v48 = vsub.f32 %v1514_v26, %v766_v47 }
 0x302   : > { %v1216_v49 = vpop.eup %1215  ;;  %v785_v50 = vsub.f32 %v1512_v24, %v764_v9 }
 0x303   : > { %v1218_v51 = vpop.eup %1217  ;;  %802 = vst [vmem:[%s1538_s8 + $0x58] sm:$0xff] %v786_v48  ;;  %v770_v18 = vmul.f32 0.6931472, %v1216_v49 }
 0x304   : > { %801 = vst [vmem:[%s1538_s8 + $0x50] sm:$0xff] %v785_v50  ;;  %v768_v16 = vmul.f32 0.6931472, %v1218_v51 }
 0x305   : > { %v788_v52 = vsub.f32 %v1522_v33, %v770_v18 }
 0x306   : > { %v1220_v53 = vpop.eup %1219  ;;  %v787_v54 = vsub.f32 %v1519_v31, %v768_v16 }
 0x307   : > { %v1222_v26 = vpop.eup %1221  ;;  %804 = vst [vmem:[%s1538_s8 + $0x68] sm:$0xff] %v788_v52  ;;  %v774_v56 = vmul.f32 0.6931472, %v1220_v53 }
 0x308   : > { %803 = vst [vmem:[%s1538_s8 + $0x60] sm:$0xff] %v787_v54  ;;  %v772_v24 = vmul.f32 0.6931472, %v1222_v26 }
 0x309   : > { %v790_v57 = vsub.f32 %v1530_v41, %v774_v56 }
 0x30a   : > { %v789_v31 = vsub.f32 %v1527_v39, %v772_v24 }
 0x30b   : > { %806 = vst [vmem:[%s1538_s8 + $0x78] sm:$0xff] %v790_v57 }
 0x30c   : > { %805 = vst [vmem:[%s1538_s8 + $0x70] sm:$0xff] %v789_v31 }
 0x30d   : > { %1236 = shalt.err (!%p1233_p3)
}
 0x30e   : > { %s1237_s23 = scalar_lea.hbm %s1573_s13, 2048  ;;  %s1241_s30 = scalar_lea.hbm %s1627_s5, 4096 }
 0x30f   : > { %p1238_p4 = scmp.ne.s32.totalorder %s1573_s13, %s1237_s23  ;;  %p1242_p9 = scmp.lt.s32.totalorder %s1573_s13, %s1627_s5 }
 0x310   : > { %p1243_p10 = scmp.lt.s32.totalorder %s1241_s30, %s1237_s23 }
 0x311   : > { %p1239_p7 = pnand %p1238_p4, %p1356_p5 }
 0x312   : > { %p1244_p11 = por %p1243_p10, %p1242_p9 }
 0x313   : > { %p1240_p8 = pneg %p1239_p7 }
 0x315   : > { %p1245_p12 = pnand %p1244_p11, %p1240_p8 }
 0x317   : > { %1248 = shalt.err (!%p1245_p12)
}
 0x318   : > { %s1286_s8 = smov 128   ;;  %s1287_s9 = smov 8  }
 0x319   : > { %1086 = dma.vmem_to_hbm [thread:$0]  (%p1356_p5), %s1575_s10, 2048, %s1573_s13, %s1582_s22, %s1286_s8, %s1286_s8, %s1287_s9  }
 0x31a PF: > { %p1092_p13 = scmp.ge.s32.totalorder %s1283_s21, 2  ;;  %s836_s11 = sand.u32 1, %s1271_s18  }
 0x31b   : > { %s837_s12 = scalar_lea.sflag [#allocation3], %s836_s11 }
 0x31c   : > { %p1089_p0 = pnand %p1092_p13, %p1360_p6 }
 0x31e   : > { %p1090_p1 = pneg %p1089_p0 }
 0x320   : > { %1266 = dma.done.wait (%p1090_p1), %s837_s12, 2048  }
 0x321   : > { %1268 = vsyncadd (%p1090_p1), %s837_s12, 4294965248  ;;  %p15_p2 = scmp.ge.s32.totalorder %s1343_s24, 4   ;;  %s1630_s18 = smov %s1275_s19 }
 0x322   : > { %s1631_s19 = smov %s1279_s20  ;;  %s1632_s20 = smov %s1354_s27 }
 0x323   : > { %s1633_s21 = smov %s1343_s24  ;;  %17 = sbr.rel (!%p15_p2) target bundleno = 3 (0x3), region = 75 }
 0x328   :  { %842 = vsyncpa [#allocation3], 1 }
 0x329   :  { %844 = vsyncpa [#allocation3 + $0x1], 1 }

</bundles_post_ra>
